<compile_context>
chip_gen: v7x
topology: tpu7x:2x2x1
jax: 0.10.0
libtpu: 0.0.40
codegen_flags: <defaults>
</compile_context>

<pallas_src>
import functools

import jax
import jax.numpy as jnp
from jax import lax
from jax.experimental import pallas as pl
from jax.experimental.pallas import tpu as pltpu


def _attention_kernel(kc, xq_ref, xk_ref, wkv_ref, bkv_ref, o_ref,
                      q_sc, m_sc, l_sc, acc_sc):
    """One (batch, q-tile, kv-tile) grid step.

    Layouts (channels on sublanes, pixels on lanes):
      xq_ref : (1, C, tq)     bf16  query pixels
      xk_ref : (1, C, tk)     bf16  key/value pixels
      wkv_ref: (C, Kc+Vc)     bf16  fused f_key|f_value 1x1-conv weights (BN folded)
      bkv_ref: (Kc+Vc, 1)     f32   fused biases
      o_ref  : (1, Vc, tq)    f32
      q_sc   : (Kc, tq)       bf16  cached query features (per q-tile)
      m_sc/l_sc: (1, tq) f32, acc_sc: (Vc, tq) f32  — online-softmax state
    """
    ki = pl.program_id(2)
    dn_cc = (((0,), (0,)), ((), ()))  # contract leading (channel) axis of both

    wkv = wkv_ref[...]
    bkv = bkv_ref[...]

    @pl.when(ki == 0)
    def _init():
        # f_query shares f_key's conv+BN weights -> only first kc rows needed.
        q_full = lax.dot_general(wkv, xq_ref[0], dn_cc,
                                 preferred_element_type=jnp.float32) + bkv
        q_sc[...] = q_full[:kc].astype(jnp.bfloat16)
        m_sc[...] = jnp.full(m_sc.shape, -jnp.inf, m_sc.dtype)
        l_sc[...] = jnp.zeros(l_sc.shape, l_sc.dtype)
        acc_sc[...] = jnp.zeros(acc_sc.shape, acc_sc.dtype)

    # Fused key|value projection of this kv tile: one MXU pass over x_k.
    kv = lax.dot_general(wkv, xk_ref[0], dn_cc,
                         preferred_element_type=jnp.float32) + bkv   # (kc+vc, tk)
    k_feat = kv[:kc].astype(jnp.bfloat16)                            # (kc, tk)
    v_feat = kv[kc:].astype(jnp.bfloat16)                            # (vc, tk)

    # energy[j, i] = <key_j, query_i> -> (tk, tq); softmax runs over j
    # (sublane axis) so the normalization broadcasts lane-wise for free.
    energy = lax.dot_general(k_feat, q_sc[...], dn_cc,
                             preferred_element_type=jnp.float32)     # (tk, tq)

    # Online softmax — elementwise math kept in f32 (only MXU operands bf16).
    m_prev = m_sc[...]
    m_new = jnp.maximum(m_prev, jnp.max(energy, axis=0, keepdims=True))  # (1, tq)
    alpha = jnp.exp(m_prev - m_new)
    p = jnp.exp(energy - m_new)                                          # (tk, tq)
    l_sc[...] = alpha * l_sc[...] + jnp.sum(p, axis=0, keepdims=True)
    acc_sc[...] = alpha * acc_sc[...] + lax.dot_general(
        v_feat, p.astype(jnp.bfloat16), (((1,), (0,)), ((), ())),
        preferred_element_type=jnp.float32)                              # (vc, tq)
    m_sc[...] = m_new

    @pl.when(ki == pl.num_programs(2) - 1)
    def _finalize():
        inv_l = pl.reciprocal(l_sc[...], approx=True)
        o_ref[0] = (acc_sc[...] * inv_l).astype(o_ref.dtype)


def attention_block(x_nchw, wk, bk, wv, bv, *, tq=128, tk=128):
    """x_nchw: (B, C, H, W). wk: (C, Kc), bk: (Kc,), wv: (C, Vc), bv: (Vc,).
    wk/bk already have the eval-mode BatchNorm folded in. Returns (B, Vc, H, W)."""
    B, C, H, W = x_nchw.shape
    HW = H * W
    kc = wk.shape[1]
    vc = wv.shape[1]
    assert wk.shape[0] == C and wv.shape[0] == C

    # Tile sizes; fall back to a single full block if HW is not tile-aligned.
    tq = tq if HW % tq == 0 else HW
    tk = tk if HW % tk == 0 else HW
    # TODO(synk): non-128-multiple HW falls back to one (HW, HW) energy block;
    # pad the spatial dim upstream for very large unaligned inputs.

    # NCHW -> (B, C, HW): free reshape, no transpose. bf16 halves x DMA traffic.
    x = x_nchw.reshape(B, C, HW).astype(jnp.bfloat16)
    wkv = jnp.concatenate([wk, wv], axis=1).astype(jnp.bfloat16)     # (C, kc+vc)
    bkv = jnp.concatenate([bk, bv]).reshape(kc + vc, 1).astype(jnp.float32)

    kernel = functools.partial(_attention_kernel, kc)

    out = pl.pallas_call(
        kernel,
        out_shape=jax.ShapeDtypeStruct((B, vc, HW), jnp.float32),
        grid=(B, HW // tq, HW // tk),
        in_specs=[
            pl.BlockSpec((1, C, tq), lambda b, qi, ki: (b, 0, qi)),   # query pixels
            pl.BlockSpec((1, C, tk), lambda b, qi, ki: (b, 0, ki)),   # key/value pixels
            pl.BlockSpec((C, kc + vc), lambda b, qi, ki: (0, 0)),     # fused weights
            pl.BlockSpec((kc + vc, 1), lambda b, qi, ki: (0, 0)),     # fused biases
        ],
        out_specs=pl.BlockSpec((1, vc, tq), lambda b, qi, ki: (b, 0, qi)),
        scratch_shapes=[
            pltpu.VMEM((kc, tq), jnp.bfloat16),   # cached query features
            pltpu.VMEM((1, tq), jnp.float32),     # running max
            pltpu.VMEM((1, tq), jnp.float32),     # running sum
            pltpu.VMEM((vc, tq), jnp.float32),    # output accumulator
        ],
        compiler_params=pltpu.CompilerParams(
            dimension_semantics=("parallel", "parallel", "arbitrary")),
    )(x, x, wkv, bkv)

    # (B, Vc, HW) -> (B, Vc, H, W): free reshape, matches PyTorch's .view().
    return out.reshape(B, vc, H, W)


def init_params(key, in_channels, key_channels, value_channels):
    """Deterministic synthetic parameters. 1x1 conv weights stored as
    (in_channels, out_channels); eval-mode BatchNorm folded into f_key."""
    k1, k2, k3, k4, k5, k6 = jax.random.split(key, 6)
    wk = 0.1 * jax.random.normal(k1, (in_channels, key_channels), jnp.float32)
    bk = 0.1 * jax.random.normal(k2, (key_channels,), jnp.float32)
    wv = 0.1 * jax.random.normal(k3, (in_channels, value_channels), jnp.float32)
    bv = 0.1 * jax.random.normal(k4, (value_channels,), jnp.float32)

    gamma = 1.0 + 0.1 * jax.random.normal(k5, (key_channels,), jnp.float32)
    beta = 0.1 * jax.random.normal(k6, (key_channels,), jnp.float32)
    running_mean = jnp.zeros((key_channels,), jnp.float32)
    running_var = jnp.ones((key_channels,), jnp.float32)
    eps = 1e-5

    # TODO(synk): BatchNorm is folded in eval mode (running stats); PyTorch
    # training-mode batch-statistic normalization is not reproduced.
    scale = gamma / jnp.sqrt(running_var + eps)
    wk_folded = wk * scale[None, :]
    bk_folded = (bk - running_mean) * scale + beta
    return wk_folded, bk_folded, wv, bv


def _reference(x_nchw, wk, bk, wv, bv):
    """Pure-JAX f32 reference mirroring the PyTorch forward."""
    B, C, H, W = x_nchw.shape
    HW = H * W
    x = x_nchw.reshape(B, C, HW).astype(jnp.float32)                  # (B, C, HW)
    k = jnp.einsum("ck,bcp->bkp", wk, x) + bk[None, :, None]          # (B, Kc, HW)
    v = jnp.einsum("cv,bcp->bvp", wv, x) + bv[None, :, None]          # (B, Vc, HW)
    energy = jnp.einsum("bci,bcj->bij", k, k)                         # (B, HW, HW)
    attn = jax.nn.softmax(energy, axis=-1)
    out = jnp.einsum("bvj,bij->bvi", v, attn)                         # (B, Vc, HW)
    return out.reshape(B, -1, H, W)


if __name__ == "__main__":
    B, C, H, W = 2, 4, 16, 16
    KEY_CH, VAL_CH = 4, 4

    root = jax.random.PRNGKey(0)
    kx, kp = jax.random.split(root)
    x = jax.random.normal(kx, (B, C, H, W), jnp.float32)
    wk, bk, wv, bv = init_params(kp, C, KEY_CH, VAL_CH)

    out = attention_block(x, wk, bk, wv, bv)   # HW=256 -> grid (2, 2, 2)
    out = jax.block_until_ready(out)

    ref = _reference(x, wk, bk, wv, bv)
    assert out.shape == (B, VAL_CH, H, W)
    # Kernel uses bf16 MXU operands (f32 accumulate, f32 softmax), so compare
    # against the f32 reference at a bf16-appropriate tolerance.
    assert jnp.allclose(out, ref, atol=1e-2, rtol=1e-2), \
        float(jnp.max(jnp.abs(out - ref)))

    print("KERNEL_OK")
</pallas_src>

<mosaic_0001>
module attributes {stable_mosaic.version = 11 : i64} {
  func.func @_attention_kernel(%arg0: i32, %arg1: i32, %arg2: i32, %arg3: memref<1x4x128xbf16, #tpu.memory_space<vmem>>, %arg4: memref<1x4x128xbf16, #tpu.memory_space<vmem>>, %arg5: memref<4x8xbf16, #tpu.memory_space<vmem>>, %arg6: memref<8x1xf32, #tpu.memory_space<vmem>>, %arg7: memref<1x4x128xf32, #tpu.memory_space<vmem>>, %arg8: memref<4x128xbf16, #tpu.memory_space<vmem>>, %arg9: memref<1x128xf32, #tpu.memory_space<vmem>>, %arg10: memref<1x128xf32, #tpu.memory_space<vmem>>, %arg11: memref<4x128xf32, #tpu.memory_space<vmem>>) attributes {dimension_semantics = [#tpu.dimension_semantics<parallel>, #tpu.dimension_semantics<parallel>, #tpu.dimension_semantics<arbitrary>], iteration_bounds = array<i64: 2, 2, 2>, scalar_prefetch = 0 : i64, scratch_operands = 4 : i64, tpu.core_type = #tpu.core_type<tc>, window_params = [{transform_indices = @transform_0, window_bounds = array<i64: 1, 4, 128>}, {transform_indices = @transform_1, window_bounds = array<i64: 1, 4, 128>}, {pipeline_mode = #tpu.pipeline_mode<synchronous>, transform_indices = @transform_2, window_bounds = array<i64: 4, 8>}, {pipeline_mode = #tpu.pipeline_mode<synchronous>, transform_indices = @transform_3, window_bounds = array<i64: 8, 1>}, {transform_indices = @transform_4, window_bounds = array<i64: 1, 4, 128>}]} {
    %c0 = arith.constant 0 : index
    %c0_0 = arith.constant 0 : index
    %0 = vector.load %arg5[%c0, %c0_0] : memref<4x8xbf16, #tpu.memory_space<vmem>>, vector<4x8xbf16>
    %c0_1 = arith.constant 0 : index
    %c0_2 = arith.constant 0 : index
    %1 = vector.load %arg6[%c0_1, %c0_2] : memref<8x1xf32, #tpu.memory_space<vmem>>, vector<8x1xf32>
    %c0_i32 = arith.constant 0 : i32
    %2 = arith.cmpi eq, %arg2, %c0_i32 : i32
    %3 = arith.extui %2 : i1 to i32
    %c0_i32_3 = arith.constant 0 : i32
    %4 = arith.cmpi ne, %3, %c0_i32_3 : i32
    scf.if %4 {
      %c0_26 = arith.constant 0 : index
      %c0_27 = arith.constant 0 : index
      %c0_28 = arith.constant 0 : index
      %42 = vector.load %arg3[%c0_26, %c0_27, %c0_28] : memref<1x4x128xbf16, #tpu.memory_space<vmem>>, vector<1x4x128xbf16>
      %43 = vector.shape_cast %42 : vector<1x4x128xbf16> to vector<4x128xbf16>
      %cst_29 = arith.constant dense<0.000000e+00> : vector<8x128xf32>
      %44 = tpu.matmul %0, %43, %cst_29 {dimension_numbers = #tpu.dot_dimension_numbers<[0], [0], [1], [1], [0, 1, 1, 1], [], []>} : vector<4x8xbf16>, vector<4x128xbf16>, vector<8x128xf32> -> vector<8x128xf32>
      %45 = vector.broadcast %1 : vector<8x1xf32> to vector<8x128xf32>
      %46 = arith.addf %44, %45 : vector<8x128xf32>
      %47 = vector.extract_strided_slice %46 {offsets = [0, 0], sizes = [4, 128], strides = [1, 1]} : vector<8x128xf32> to vector<4x128xf32>
      %48 = arith.truncf %47 : vector<4x128xf32> to vector<4x128xbf16>
      %c0_30 = arith.constant 0 : index
      %c0_31 = arith.constant 0 : index
      %49 = vector.load %arg8[%c0_30, %c0_31] : memref<4x128xbf16, #tpu.memory_space<vmem>>, vector<4x128xbf16>
      tpu.vector_store %arg8[%c0_30, %c0_31], %48 {strides = array<i32>} : memref<4x128xbf16, #tpu.memory_space<vmem>>, vector<4x128xbf16>,
      %cst_32 = arith.constant 0xFF800000 : f32
      %50 = vector.broadcast %cst_32 : f32 to vector<1x128xf32>
      %c0_33 = arith.constant 0 : index
      %c0_34 = arith.constant 0 : index
      %51 = vector.load %arg9[%c0_33, %c0_34] : memref<1x128xf32, #tpu.memory_space<vmem>>, vector<1x128xf32>
      tpu.vector_store %arg9[%c0_33, %c0_34], %50 {strides = array<i32>} : memref<1x128xf32, #tpu.memory_space<vmem>>, vector<1x128xf32>,
      %cst_35 = arith.constant 0.000000e+00 : f32
      %52 = vector.broadcast %cst_35 : f32 to vector<1x128xf32>
      %c0_36 = arith.constant 0 : index
      %c0_37 = arith.constant 0 : index
      %53 = vector.load %arg10[%c0_36, %c0_37] : memref<1x128xf32, #tpu.memory_space<vmem>>, vector<1x128xf32>
      tpu.vector_store %arg10[%c0_36, %c0_37], %52 {strides = array<i32>} : memref<1x128xf32, #tpu.memory_space<vmem>>, vector<1x128xf32>,
      %cst_38 = arith.constant 0.000000e+00 : f32
      %54 = vector.broadcast %cst_38 : f32 to vector<4x128xf32>
      %c0_39 = arith.constant 0 : index
      %c0_40 = arith.constant 0 : index
      %55 = vector.load %arg11[%c0_39, %c0_40] : memref<4x128xf32, #tpu.memory_space<vmem>>, vector<4x128xf32>
      tpu.vector_store %arg11[%c0_39, %c0_40], %54 {strides = array<i32>} : memref<4x128xf32, #tpu.memory_space<vmem>>, vector<4x128xf32>,
    } else {
    }
    %c0_4 = arith.constant 0 : index
    %c0_5 = arith.constant 0 : index
    %c0_6 = arith.constant 0 : index
    %5 = vector.load %arg4[%c0_4, %c0_5, %c0_6] : memref<1x4x128xbf16, #tpu.memory_space<vmem>>, vector<1x4x128xbf16>
    %6 = vector.shape_cast %5 : vector<1x4x128xbf16> to vector<4x128xbf16>
    %cst = arith.constant dense<0.000000e+00> : vector<8x128xf32>
    %7 = tpu.matmul %0, %6, %cst {dimension_numbers = #tpu.dot_dimension_numbers<[0], [0], [1], [1], [0, 1, 1, 1], [], []>} : vector<4x8xbf16>, vector<4x128xbf16>, vector<8x128xf32> -> vector<8x128xf32>
    %8 = vector.broadcast %1 : vector<8x1xf32> to vector<8x128xf32>
    %9 = arith.addf %7, %8 : vector<8x128xf32>
    %10 = vector.extract_strided_slice %9 {offsets = [0, 0], sizes = [4, 128], strides = [1, 1]} : vector<8x128xf32> to vector<4x128xf32>
    %11 = arith.truncf %10 : vector<4x128xf32> to vector<4x128xbf16>
    %12 = vector.extract_strided_slice %9 {offsets = [4, 0], sizes = [4, 128], strides = [1, 1]} : vector<8x128xf32> to vector<4x128xf32>
    %13 = arith.truncf %12 : vector<4x128xf32> to vector<4x128xbf16>
    %c0_7 = arith.constant 0 : index
    %c0_8 = arith.constant 0 : index
    %14 = vector.load %arg8[%c0_7, %c0_8] : memref<4x128xbf16, #tpu.memory_space<vmem>>, vector<4x128xbf16>
    %cst_9 = arith.constant dense<0.000000e+00> : vector<128x128xf32>
    %15 = tpu.matmul %11, %14, %cst_9 {dimension_numbers = #tpu.dot_dimension_numbers<[0], [0], [1], [1], [0, 1, 1, 1], [], []>} : vector<4x128xbf16>, vector<4x128xbf16>, vector<128x128xf32> -> vector<128x128xf32>
    %c0_10 = arith.constant 0 : index
    %c0_11 = arith.constant 0 : index
    %16 = vector.load %arg9[%c0_10, %c0_11] : memref<1x128xf32, #tpu.memory_space<vmem>>, vector<1x128xf32>
    %cst_12 = arith.constant dense<0xFF800000> : vector<128xf32>
    %17 = vector.multi_reduction <maximumf>, %15, %cst_12 [0] : vector<128x128xf32> to vector<128xf32>
    %18 = vector.shape_cast %17 : vector<128xf32> to vector<1x128xf32>
    %19 = arith.maximumf %16, %18 : vector<1x128xf32>
    %20 = arith.subf %16, %19 : vector<1x128xf32>
    %21 = math.exp %20 : vector<1x128xf32>
    %22 = vector.broadcast %19 : vector<1x128xf32> to vector<128x128xf32>
    %23 = arith.subf %15, %22 : vector<128x128xf32>
    %24 = math.exp %23 : vector<128x128xf32>
    %c0_13 = arith.constant 0 : index
    %c0_14 = arith.constant 0 : index
    %25 = vector.load %arg10[%c0_13, %c0_14] : memref<1x128xf32, #tpu.memory_space<vmem>>, vector<1x128xf32>
    %26 = arith.mulf %21, %25 : vector<1x128xf32>
    %cst_15 = arith.constant dense<0.000000e+00> : vector<128xf32>
    %27 = vector.multi_reduction <add>, %24, %cst_15 [0] : vector<128x128xf32> to vector<128xf32>
    %28 = vector.shape_cast %27 : vector<128xf32> to vector<1x128xf32>
    %29 = arith.addf %26, %28 : vector<1x128xf32>
    %c0_16 = arith.constant 0 : index
    %c0_17 = arith.constant 0 : index
    %30 = vector.load %arg10[%c0_16, %c0_17] : memref<1x128xf32, #tpu.memory_space<vmem>>, vector<1x128xf32>
    tpu.vector_store %arg10[%c0_16, %c0_17], %29 {strides = array<i32>} : memref<1x128xf32, #tpu.memory_space<vmem>>, vector<1x128xf32>,
    %c0_18 = arith.constant 0 : index
    %c0_19 = arith.constant 0 : index
    %31 = vector.load %arg11[%c0_18, %c0_19] : memref<4x128xf32, #tpu.memory_space<vmem>>, vector<4x128xf32>
    %32 = vector.broadcast %21 : vector<1x128xf32> to vector<4x128xf32>
    %33 = arith.mulf %32, %31 : vector<4x128xf32>
    %34 = arith.truncf %24 : vector<128x128xf32> to vector<128x128xbf16>
    %cst_20 = arith.constant dense<0.000000e+00> : vector<4x128xf32>
    %35 = tpu.matmul %13, %34, %cst_20 {dimension_numbers = #tpu.dot_dimension_numbers<[1], [0], [0], [1], [0, 0, 1, 1], [], []>} : vector<4x128xbf16>, vector<128x128xbf16>, vector<4x128xf32> -> vector<4x128xf32>
    %36 = arith.addf %33, %35 : vector<4x128xf32>
    %c0_21 = arith.constant 0 : index
    %c0_22 = arith.constant 0 : index
    %37 = vector.load %arg11[%c0_21, %c0_22] : memref<4x128xf32, #tpu.memory_space<vmem>>, vector<4x128xf32>
    tpu.vector_store %arg11[%c0_21, %c0_22], %36 {strides = array<i32>} : memref<4x128xf32, #tpu.memory_space<vmem>>, vector<4x128xf32>,
    %c0_23 = arith.constant 0 : index
    %c0_24 = arith.constant 0 : index
    %38 = vector.load %arg9[%c0_23, %c0_24] : memref<1x128xf32, #tpu.memory_space<vmem>>, vector<1x128xf32>
    tpu.vector_store %arg9[%c0_23, %c0_24], %19 {strides = array<i32>} : memref<1x128xf32, #tpu.memory_space<vmem>>, vector<1x128xf32>,
    %c1_i32 = arith.constant 1 : i32
    %39 = arith.cmpi eq, %arg2, %c1_i32 : i32
    %40 = arith.extui %39 : i1 to i32
    %c0_i32_25 = arith.constant 0 : i32
    %41 = arith.cmpi ne, %40, %c0_i32_25 : i32
    scf.if %41 {
      %c0_26 = arith.constant 0 : index
      %c0_27 = arith.constant 0 : index
      %42 = vector.load %arg10[%c0_26, %c0_27] : memref<1x128xf32, #tpu.memory_space<vmem>>, vector<1x128xf32>
      %43 = tpu.reciprocal %42 {approx = true} : vector<1x128xf32> -> vector<1x128xf32>
      %c0_28 = arith.constant 0 : index
      %c0_29 = arith.constant 0 : index
      %44 = vector.load %arg11[%c0_28, %c0_29] : memref<4x128xf32, #tpu.memory_space<vmem>>, vector<4x128xf32>
      %45 = vector.broadcast %43 : vector<1x128xf32> to vector<4x128xf32>
      %46 = arith.mulf %44, %45 : vector<4x128xf32>
      %c0_30 = arith.constant 0 : index
      %c0_31 = arith.constant 0 : index
      %c0_32 = arith.constant 0 : index
      %47 = vector.load %arg7[%c0_30, %c0_31, %c0_32] : memref<1x4x128xf32, #tpu.memory_space<vmem>>, vector<1x4x128xf32>
      %48 = vector.shape_cast %47 : vector<1x4x128xf32> to vector<4x128xf32>
      %49 = vector.shape_cast %46 : vector<4x128xf32> to vector<1x4x128xf32>
      tpu.vector_store %arg7[%c0_30, %c0_31, %c0_32], %49 {strides = array<i32>} : memref<1x4x128xf32, #tpu.memory_space<vmem>>, vector<1x4x128xf32>,
    } else {
    }
    return
  }
  func.func @transform_0(%arg0: i32, %arg1: i32, %arg2: i32) -> (i32, i32, i32) {
    %c0_i32 = arith.constant 0 : i32
    %c0_i32_0 = arith.constant 0 : i32
    return %arg0, %c0_i32, %arg1 : i32, i32, i32
  }
  func.func @transform_1(%arg0: i32, %arg1: i32, %arg2: i32) -> (i32, i32, i32) {
    %c0_i32 = arith.constant 0 : i32
    %c0_i32_0 = arith.constant 0 : i32
    return %arg0, %c0_i32, %arg2 : i32, i32, i32
  }
  func.func @transform_2(%arg0: i32, %arg1: i32, %arg2: i32) -> (i32, i32) {
    %c0_i32 = arith.constant 0 : i32
    %c0_i32_0 = arith.constant 0 : i32
    %c0_i32_1 = arith.constant 0 : i32
    return %c0_i32, %c0_i32_0 : i32, i32
  }
  func.func @transform_3(%arg0: i32, %arg1: i32, %arg2: i32) -> (i32, i32) {
    %c0_i32 = arith.constant 0 : i32
    %c0_i32_0 = arith.constant 0 : i32
    %c0_i32_1 = arith.constant 0 : i32
    return %c0_i32, %c0_i32_0 : i32, i32
  }
  func.func @transform_4(%arg0: i32, %arg1: i32, %arg2: i32) -> (i32, i32, i32) {
    %c0_i32 = arith.constant 0 : i32
    %c0_i32_0 = arith.constant 0 : i32
    return %arg0, %c0_i32, %arg1 : i32, i32, i32
  }
}

</mosaic_0001>

<bundles_post_ra>
// kernel: tpu_custom_call.1
= control target key start
LH: loop header
LB: loop body
LE: loop exit
PB: predicated region body
PF: predicated region fallthrough
CT: control target
= control target key end

     0   :  { %s1666_s0 = inlined_call_operand.vmem [shape: bf16[2,4,256], index: 0, kind: input, shape index: {}]   ;;  %s1667_s1 = inlined_call_operand.hbm [shape: bf16[2,4,256], index: 1, kind: input, shape index: {}]   ;;  %s1668_s2 = inlined_call_operand.vmem [shape: bf16[4,8], index: 2, kind: input, shape index: {}]   ;;  %s1669_s3 = inlined_call_operand.vmem [shape: f32[8,1], index: 3, kind: input, shape index: {}]   ;;  %s1670_s4 = inlined_call_operand.hbm [shape: f32[2,4,256], index: 4, kind: output, shape index: {}]  }
   0x1   :  { %1681 = sst [smem:[#allocation18_spill]] %s1667_s1 }
   0x2   :  { %1682 = sst [smem:[#allocation19_spill]] %s1670_s4 }
   0x3   :  { %9 = vsyncpa [#allocation7], 0 }
   0x4   :  { %11 = vsyncpa [#allocation7 + $0x1], 0 }
   0x5   :  { %12 = vsyncpa [#allocation8], 0 }
   0x6   :  { %14 = vsyncpa [#allocation8 + $0x1], 0  ;;  %s1339_s15 = smov 0   ;;  %s1341_s16 = smov 0  }
   0x7   :  { %s1343_s17 = smov 0   ;;  %s1345_s18 = smov 0  }
   0x8   :  { %s1347_s19 = smov 0   ;;  %s1349_s20 = smov 0  }
   0x9   :  { %s1351_s21 = smov 0   ;;  %s1353_s22 = smov 0  }
   0xa   :  { %s1355_s23 = smov 0   ;;  %s1357_s24 = smov 0  }
   0xb   :  { %s1359_s25 = smov 0   ;;  %s1361_s26 = smov 0  }
   0xc   :  { %s1363_s27 = smov 0  }
   0xd LB: > { %1683 = sst [smem:[#allocation12_spill]] %s1255_s15  ;;  %s870_s28 = sadd.s32 4294967295, %s1303_s27   ;;  %s1303_s27 = sphi %s1363_s27, %s20_s27   ;;  %s1299_s26 = sphi %s1361_s26, %s1719_s26   ;;  %s1295_s25 = sphi %s1359_s25, %s1718_s25   ;;  %s1291_s24 = sphi %s1357_s24, %s1717_s24   ;;  %s1287_s23 = sphi %s1355_s23, %s1716_s23   ;;  %s1283_s22 = sphi %s1353_s22, %s1705_s22   ;;  %s1279_s21 = sphi %s1351_s21, %s1715_s21   ;;  %s1275_s20 = sphi %s1349_s20, %s1714_s20   ;;  %s1271_s19 = sphi %s1347_s19, %s1713_s19   ;;  %s1267_s18 = sphi %s1345_s18, %s1712_s18   ;;  %s1263_s17 = sphi %s1343_s17, %s1711_s17   ;;  %s1259_s16 = sphi %s1341_s16, %s1710_s16   ;;  %s1255_s15 = sphi %s1339_s15, %s1709_s15  }
   0xe   : > { %1684 = sst [smem:[#allocation13_spill]] %s1295_s25  ;;  %s871_s29 = sadd.s32 4294967294, %s1303_s27  }
   0xf   : > { %s32_s30 = sadd.s32 1, %s1291_s24  ;;  %s35_s5 = sadd.s32 1, %s1295_s25 }
  0x10   : > { %p33_p0 = scmp.ge.s32.totalorder %s32_s30, 2  ;;  %s39_s6 = sadd.s32 1, %s1299_s26 }
  0x11   : > { %s76_s7 = sadd.s32 1, %s1275_s20  ;;  %p83_p1 = scmp.ne.s32.totalorder %s1275_s20, %s1271_s19 }
  0x12   : > { %s1721_s30 = smov (%p33_p0, %s32_s30), 0  ;;  %s1723_s5 = smov (!%p33_p0, %s35_s5), %s1295_s25 }
  0x13   : > { %1685 = sst [smem:[#allocation14_spill]] %s1721_s30  ;;  %s72_s8 = ssub.s32 %s1291_s24, %s1721_s30 }
  0x14   : > { %p84_p2 = scmp.eq.s32.totalorder %s1303_s27, 0  ;;  %p37_p3 = scmp.ge.s32.totalorder %s1723_s5, 2 }
  0x15   : > { %p89_p4 = scmp.ne.s32.totalorder %s1271_s19, %s1267_s18  ;;  %p90_p6 = scmp.eq.s32.totalorder %s870_s28, 0 }
  0x16   : > { %p1417_p5 = por %p84_p2, %p83_p1  ;;  %s1725_s5 = smov (%p37_p3, %s1723_s5), 0 }
  0x17   : > { %1687 = sst [smem:[#allocation15_spill]] %s1725_s5  ;;  %s1727_s6 = smov (!%p37_p3, %s39_s6), %s1299_s26 }
  0x18   : > { %p1424_p7 = por %p90_p6, %p89_p4  ;;  %s142_s11 = ssub.s32 %s1295_s25, %s1725_s5 }
  0x19   : > { %p41_p8 = scmp.ge.s32.totalorder %s1727_s6, 2  ;;  %s146_s12 = sadd.s32 1, %s1263_s17 }
  0x1a   : > { %p156_p9 = scmp.ne.s32.totalorder %s1263_s17, %s1259_s16  ;;  %p157_p10 = scmp.eq.s32.totalorder %s870_s28, 7 }
  0x1b   : > { %s1729_s6 = smov (%p41_p8, %s1727_s6), 0  ;;  %p162_p12 = scmp.ne.s32.totalorder %s1259_s16, %s1255_s15 }
  0x1c   : > { %1689 = sst [smem:[#allocation16_spill]] %s1729_s6  ;;  %p1435_p11 = por %p157_p10, %p156_p9 }
  0x1d   : > { %s71_s14 = ssub.s32 %s1299_s26, %s1729_s6  ;;  %p163_p13 = scmp.eq.s32.totalorder %s871_s29, 7 }
  0x1e   : > { %s1690_s13 = scalar_select %p1435_p11, 1, 0 }
  0x1f   : > { %s73_s18 = sor.u32 %s72_s8, %s71_s14  ;;  %s143_s5 = sor.u32 %s142_s11, %s71_s14 }
  0x20   : > { %1691 = sst [smem:[#allocation17_spill]] %s1690_s13  ;;  %p74_p0 = scmp.eq.s32.totalorder %s73_s18, 0 }
  0x21   : > { %p144_p1 = scmp.eq.s32.totalorder %s143_s5, 0  ;;  %p1443_p2 = por %p163_p13, %p162_p12 }
  0x22   : > { %s1448_s30 = scalar_select %p74_p0, %s1275_s20, %s76_s7  }
  0x23   : > { %s1692_s28 = scalar_select %p1443_p2, 1, 0 }
  0x24   : > { %s1451_s25 = scalar_select %p144_p1, %s1263_s17, %s146_s12  }
  0x25   : > { %p984_p3 = scmp.lt.s32.totalorder %s1303_s27, 8  ;;  %s200_s4 = sand.u32 1, %s1275_s20  }
  0x26   : > { %s874_s15 = sshll.u32 %s200_s4, 1  ;;  %s875_s6 = sshll.u32 %s1299_s26, 1 }
  0x27   : > { %s209_s29 = sadd.s32 %s1291_s24, %s875_s6  ;;  %s204_s8 = scalar_lea.vmem [#allocation6], %s874_s15 }
  0x28   : > { %s213_s11 = sshll.u32 %s204_s8, 4  ;;  %s876_s14 = sshll.u32 %s209_s29, 5  ;;  %s1457_s11 = int_to_ptr.vmem [resolvable:$true] %s213_s11 }
  0x29   : > { %s1693_s1 = sld [smem:[#allocation18_spill]]  ;;  %p1466_p4 = pnand %p984_p3, %p1417_p5 }
  0x2a   : > { %s201_s15 = scalar_lea.sflag [#allocation7], %s200_s4 }
  0x2b   : > { %p1137_p10 = pneg %p1466_p4 }
  0x2f   : > { %s1462_s13 = scalar_lea.hbm %s1693_s1, %s876_s14  ;;  %s1140_s29 = scalar_lea.hbm %s1693_s1, 128 }
  0x30   : > { %s1135_s6 = scalar_lea.hbm %s1462_s13, 32  ;;  %p1141_p5 = scmp.lt.u32.totalorder %s1462_s13, %s1693_s1 }
  0x31   : > { %p1136_p9 = scmp.ne.s32.totalorder %s1462_s13, %s1135_s6  ;;  %p1142_p0 = scmp.lt.u32.totalorder %s1140_s29, %s1135_s6 }
  0x32   : > { %p1144_p3 = scmp.lt.u32.totalorder %s1135_s6, %s1462_s13 }
  0x33   : > { %p1138_p12 = pnand %p1137_p10, %p1136_p9  ;;  %p1143_p1 = por %p1142_p0, %p1141_p5 }
  0x35   : > { %p1139_p13 = pneg %p1138_p12  ;;  %p1145_p6 = por %p1144_p3, %p1143_p1 }
  0x37   : > { %p1146_p8 = pnand %p1145_p6, %p1139_p13 }
  0x39   : > { %1149 = shalt.err (!%p1146_p8)
}
  0x3a   : > { %s1150_s4 = scalar_lea.vmem %s1457_s11, 32  ;;  %s1305_s5 = smov [#allocation6]  }
  0x3b   : > { %p1151_p9 = scmp.ne.s32.totalorder %s1457_s11, %s1150_s4  ;;  %s1155_s18 = sshll.u32 %s1305_s5, 4  ;;  %s1156_s18 = int_to_ptr.vmem [resolvable:$false] %s1155_s18 }
  0x3c   : > { %s1157_s9 = scalar_lea.vmem %s1156_s18, 64  ;;  %p1158_p11 = scmp.lt.s32.totalorder %s1457_s11, %s1156_s18 }
  0x3d   : > { %p1153_p12 = pnand %p1151_p9, %p1137_p10  ;;  %p1159_p5 = scmp.lt.s32.totalorder %s1157_s9, %s1150_s4 }
  0x3f   : > { %p1154_p2 = pneg %p1153_p12  ;;  %p1160_p0 = por %p1159_p5, %p1158_p11 }
  0x41   : > { %p1161_p1 = pnand %p1160_p0, %p1154_p2 }
  0x43   : > { %1164 = shalt.err (!%p1161_p1)
}
  0x44   : > { %979 = dma.hbm_to_vmem [thread:$0]  (!%p1466_p4), %s1462_s13, 32, %s1457_s11, %s201_s15  }
  0x45   : > { %p1695_p6 = scmp.lt.s32.totalorder %s1303_s27, 9  ;;  %p1696_p8 = scmp.ge.s32.totalorder %s1303_s27, 1 }
  0x47   : > { %p219_p10 = pnand %p1696_p8, %p1695_p6 }
  0x48   : > { %s224_s6 = sand.u32 (!%p219_p10), 1, %s1271_s19  }
  0x49   : > { %222 = sbr.rel (%p219_p10) target bundleno = 1398 (0x576), region = 36  ;;  %s1502_s12 = sshll.u32 (!%p219_p10), %s224_s6, 1 }
  0x4a   : > { %s225_s29 = scalar_lea.sflag (!%p219_p10), [#allocation7], %s224_s6 }
  0x50   : > { %1246 = dma.done.wait (%p1424_p7), %s225_s29, 32  }
  0x51   : > { %1248 = vsyncadd (%p1424_p7), %s225_s29, 4294967264  ;;  %s1680_s13 = sand.u32 1, %s1259_s16   ;;  %p261_p11 = scmp.lt.s32.totalorder %s1287_s23, 1  ;;  %v270_v0 = vld [vmem:[%s1668_s2] sm:$0x3] }
  0x52   : > { %s1513_s11 = sshll.u32 %s1680_s13, 2  ;;  %p263_p2 = scmp.lt.s32.totalorder %s1283_s22, 1  ;;  %v271_v1 = vld [vmem:[%s1669_s3] sm:$0xff] }
  0x53   : > { %s262_s7 = scalar_select %p261_p11, %s1287_s23, 1 }
  0x54   : > { %s264_s15 = scalar_select %p263_p2, %s1283_s22, 1 }
  0x55   : > { %s880_s14 = sshll.u32 %s262_s7, 1  ;;  %s260_s1 = scalar_lea.vmem [#allocation9], %s1513_s11 }
  0x56   : > { %s266_s4 = sadd.s32 %s880_s14, %s264_s15  ;;  %p882_p7 = scmp.ne.s32.totalorder %s1279_s21, 0 }
  0x57   : > { %s881_s6 = sshll.u32 %s266_s4, 1  ;;  %282 = vxpose.xlu0.c.b16.start.end [1/1] (short) (narrow) (!%p882_p7), %v270_v0, 16  ;;  %vm302_vm0 = vcmask (!%p882_p7), 1041408   ;;  %v1306_v3 = vmov (!%p882_p7), 0.0   ;;  %vm1307_vm1 = vmmov (!%p882_p7), 0   ;;  %v1308_v5 = vmov (!%p882_p7), 0  }
  0x58   : > { %s268_s13 = scalar_lea.vmem %s1666_s0, %s881_s6  ;;  %275 = sbr.rel (%p882_p7) target bundleno = 407 (0x197), region = 44  ;;  %921 = vmatprep.subr.bf16.mxu0 (!%p882_p7), %v1306_v3  ;;  %349 = vst [vmem:[#allocation4] sm:$0x1] (!%p882_p7), %v1306_v3  ;;  %350 = vst [vmem:[#allocation5] sm:$0xf] (!%p882_p7), %v1306_v3  ;;  %923 = vmatprep.mubr.msk.bf16.mxu0 (!%p882_p7), %vm1307_vm1, %v1306_v3  ;;  %vm298_vm2 = vcmask (!%p882_p7), 31744  }
  0x59   : > { %v276_v2 = vld [vmem:[%s268_s13] sm:$0x3] (!%p882_p7)  ;;  %v1309_v7 = vmov (!%p882_p7), -inf  }
  0x5a   : > { %v304_v4 = vsel (!%p882_p7), %vm302_vm0, %v276_v2, 0  ;;  %348 = vst [vmem:[#allocation3] sm:$0x1] (!%p882_p7), %v1309_v7 }
  0x5b   : > { %922 = vmatpush3.bf16.msra.mxu0 (!%p882_p7), %v304_v4 }
  0x60   : > { %1097 = vset.pattern.permute.xlu0 %v1308_v5 }
  0x61   : > { %279 = vperm.xlu0 %1097, %v271_v1  }
  0xbd   : > { %v290_v6 = vpop.trf.xlu0 }
  0xbe   : > { %924 = vmatmul.mubr.msk.bf16.vlgmr.msra.gmra.mrb[0].mxu0 %vm298_vm2, %v290_v6 }
  0xe0   : > { %v280_v8 = vpop.permute.xlu0 %279 }
 0x191   : > { %v340_v9 = vpop.f32.mrb[0].mxu0 }
 0x192   : > { %v341_v10 = vadd.f32 %v340_v9, %v280_v8  ;;  %v925_v11 = vpop.f32.mrb[1].mxu0 }
 0x193   : > { %v343_v12 = vpop.f32.mrb[2].mxu0 }
 0x194   : > { %v346_v13 = vpack.c.bf16 %v341_v10, %v341_v10  ;;  %v926_v14 = vpop.f32.mrb[3].mxu0 }
 0x196   : > { %347 = vst [vmem:[#allocation2] sm:$0x3] %v346_v13 }
 0x197 PF: > { %357 = vxpose.xlu0.c.b16.start.end [1/1] (short) (narrow) %v270_v0, 16  ;;  %s1697_s8 = scalar_lea.vmem [#allocation6], %s1502_s12  ;;  %vm377_vm3 = vcmask 1041408   ;;  %v1310_v16 = vmov 0.0   ;;  %vm1311_vm4 = vmmov 0   ;;  %v1312_v18 = vmov 0  }
 0x198   : > { %v351_v15 = vld [vmem:[%s1697_s8] sm:$0x3]  ;;  %927 = vmatprep.subr.bf16.mxu0 %v1310_v16  ;;  %929 = vmatprep.mubr.msk.bf16.mxu0 %vm1311_vm4, %v1310_v16  ;;  %vm373_vm5 = vcmask 31744   ;;  %v590_v6 = vlaneseq  ;;  %p893_p4 = scmp.ne.s32.totalorder %s1279_s21, 1 }
 0x199   : > { %v379_v17 = vsel %vm377_vm3, %v351_v15, 0  ;;  %v563_v11 = vld [vmem:[#allocation3] sm:$0x1] }
 0x19a   : > { %928 = vmatpush3.bf16.msra.mxu0 %v379_v17  ;;  %v591_v9 = vshrl.u32 %v590_v6, 7 }
 0x19b   : > { %951 = vmatprep.subr.bf16.mxu0 %v1310_v16 }
 0x19c   : > { %v1568_v13 = vsub.s32 0, %v591_v9 }
 0x19d   : > { %v422_v20 = vld [vmem:[#allocation2] sm:$0x3] }
 0x19e   : > { %971 = vmatprep.subr.msk.bf16.mxu1 %vm377_vm3, %v422_v20  ;;  %v464_v21 = vsel %vm377_vm3, %v422_v20, 0 }
 0x19f   : > { %934 = vmatpush3.bf16.msra.mxu1 %v464_v21 }
 0x1a0   : > { %1098 = vset.pattern.permute.xlu0 %v1312_v18 }
 0x1a1   : > { %354 = vperm.xlu0 %1098, %v271_v1  }
 0x1fd   : > { %v365_v19 = vpop.trf.xlu0 }
 0x1fe   : > { %930 = vmatmul.mubr.msk.bf16.vlgmr.msra.gmra.mrb[0].mxu0 %vm373_vm5, %v365_v19 }
 0x1ff   : > { %967 = vmatprep.mubr.msk.bf16.mxu0 %vm1311_vm4, %v1310_v16 }
 0x220   : > { %v355_v22 = vpop.permute.xlu0 %354 }
 0x2d1   : > { %v415_v23 = vpop.f32.mrb[0].mxu0 }
 0x2d2   : > { %v416_v24 = vadd.f32 %v415_v23, %v355_v22  ;;  %v931_v25 = vpop.f32.mrb[1].mxu0 }
 0x2d3   : > { %v418_v26 = vpop.f32.mrb[2].mxu0 }
 0x2d4   : > { %v1539_v27 = vpack.c.bf16 %v416_v24, %v416_v24  ;;  %v932_v28 = vpop.f32.mrb[3].mxu0 }
 0x2d6   : > { %423 = vxpose.xlu1.c.b16.start.end [1/1] (short) %v1539_v27, 128 }
 0x33c   : > { %v431_v29 = vpop.trf.xlu1 }
 0x33d   : > { %935 = vmatprep.mubr.msk.bf16.mxu1 %vm373_vm5, %v431_v29 }
 0x340   : > { %v432_v30 = vpop.trf.xlu1 }
 0x341   : > { %936 = vmatmul.mubr.msk.bf16.vlgmr.msra.gmra.mrb[0].mxu1 %vm373_vm5, %v432_v30 }
 0x344   : > { %v433_v31 = vpop.trf.xlu1 }
 0x345   : > { %939 = vmatprep.mubr.msk.bf16.mxu1 %vm373_vm5, %v433_v31 }
 0x348   : > { %v434_v32 = vpop.trf.xlu1 }
 0x349   : > { %940 = vmatmul.mubr.msk.bf16.gmra.mrb[4].mxu1 %vm373_vm5, %v434_v32 }
 0x34c   : > { %v435_v33 = vpop.trf.xlu1 }
 0x34d   : > { %943 = vmatprep.mubr.msk.bf16.mxu1 %vm373_vm5, %v435_v33 }
 0x350   : > { %v436_v34 = vpop.trf.xlu1 }
 0x351   : > { %944 = vmatmul.mubr.msk.bf16.gmra.mrb[8].mxu1 %vm373_vm5, %v436_v34 }
 0x354   : > { %v437_v35 = vpop.trf.xlu1 }
 0x355   : > { %947 = vmatprep.mubr.msk.bf16.mxu1 %vm373_vm5, %v437_v35 }
 0x358   : > { %v438_v36 = vpop.trf.xlu1 }
 0x359   : > { %948 = vmatmul.mubr.msk.bf16.gmra.mrb[12].mxu1 %vm373_vm5, %v438_v36 }
 0x414   : > { %v937_v37 = vpop.f32.mrb[0].mxu1 }
 0x415   : > { %v500_v38 = vpop.f32.mrb[1].mxu1 }
 0x416   : > { %v938_v39 = vpop.f32.mrb[2].mxu1 }
 0x417   : > { %v503_v40 = vpop.f32.mrb[3].mxu1 }
 0x41c   : > { %v1550_v41 = vpop.f32.mrb[4].mxu1 }
 0x41d   : > { %v566_v42 = vmax.f32 %v937_v37, %v1550_v41  ;;  %v516_v43 = vpop.f32.mrb[5].mxu1 }
 0x41e   : > { %v564_v44 = vmax.f32 %v500_v38, %v516_v43  ;;  %v1553_v45 = vpop.f32.mrb[6].mxu1 }
 0x41f   : > { %v567_v46 = vmax.f32 %v938_v39, %v1553_v45  ;;  %v519_v47 = vpop.f32.mrb[7].mxu1 }
 0x420   : > { %v565_v48 = vmax.f32 %v503_v40, %v519_v47 }
 0x424   : > { %v1556_v49 = vpop.f32.mrb[8].mxu1 }
 0x425   : > { %v570_v50 = vmax.f32 %v566_v42, %v1556_v49  ;;  %v532_v51 = vpop.f32.mrb[9].mxu1 }
 0x426   : > { %v568_v52 = vmax.f32 %v564_v44, %v532_v51  ;;  %v1559_v53 = vpop.f32.mrb[10].mxu1 }
 0x427   : > { %v571_v54 = vmax.f32 %v567_v46, %v1559_v53  ;;  %v535_v55 = vpop.f32.mrb[11].mxu1 }
 0x428   : > { %v569_v56 = vmax.f32 %v565_v48, %v535_v55 }
 0x42c   : > { %v1562_v57 = vpop.f32.mrb[12].mxu1 }
 0x42d   : > { %v574_v58 = vmax.f32 %v570_v50, %v1562_v57  ;;  %v548_v59 = vpop.f32.mrb[13].mxu1 }
 0x42e   : > { %v572_v60 = vmax.f32 %v568_v52, %v548_v59  ;;  %v1565_v61 = vpop.f32.mrb[14].mxu1 }
 0x42f   : > { %v575_v62 = vmax.f32 %v571_v54, %v1565_v61  ;;  %v551_v63 = vpop.f32.mrb[15].mxu1 }
 0x430   : > { %v573_v0 = vmax.f32 %v569_v56, %v551_v63 }
 0x431   : > { %v577_v1 = vmax.f32 %v574_v58, %v575_v62 }
 0x432   : > { %v576_v2 = vmax.f32 %v572_v60, %v573_v0 }
 0x434   : > { %v578_v3 = vmax.f32 %v576_v2, %v577_v1 }
 0x436   : > { %v579_v4 = vrot.slane %v578_v3, 4 }
 0x438   : > { %v580_v5 = vmax.f32 %v578_v3, %v579_v4 }
 0x43a   : > { %v581_v7 = vrot.slane %v580_v5, 2 }
 0x43c   : > { %v582_v8 = vmax.f32 %v580_v5, %v581_v7 }
 0x43e   : > { %v583_v10 = vrot.slane %v582_v8, 1 }
 0x440   : > { %v584_v12 = vmax.f32 %v582_v8, %v583_v10 }
 0x442   : > { %v585_v14 = vmax.f32 %v563_v11, %v584_v12 }
 0x444   : > { %v593_v15 = vrot.slane %v585_v14, %v1568_v13  ;;  %729 = vst [vmem:[#allocation3] sm:$0x1] %v585_v14 }
 0x446   : > { %v595_v17 = vsub.f32 %v500_v38, %v593_v15  ;;  %v596_v18 = vsub.f32 %v503_v40, %v593_v15  ;;  %v597_v19 = vsub.f32 %v937_v37, %v593_v15  ;;  %v598_v20 = vsub.f32 %v938_v39, %v593_v15 }
 0x447   : > { %v599_v21 = vsub.f32 %v516_v43, %v593_v15  ;;  %v600_v22 = vsub.f32 %v519_v47, %v593_v15  ;;  %v601_v23 = vsub.f32 %v1550_v41, %v593_v15  ;;  %v602_v24 = vsub.f32 %v1553_v45, %v593_v15 }
 0x448   : > { %v603_v25 = vsub.f32 %v532_v51, %v593_v15  ;;  %v604_v26 = vsub.f32 %v535_v55, %v593_v15  ;;  %v605_v28 = vsub.f32 %v1556_v49, %v593_v15  ;;  %v606_v29 = vsub.f32 %v1559_v53, %v593_v15 }
 0x449   : > { %v607_v30 = vsub.f32 %v548_v59, %v593_v15  ;;  %v608_v31 = vsub.f32 %v551_v63, %v593_v15  ;;  %v609_v32 = vsub.f32 %v1562_v57, %v593_v15  ;;  %v610_v33 = vsub.f32 %v1565_v61, %v593_v15 }
 0x44a   : > { %v611_v34 = vmul.f32 1.442695, %v595_v17  ;;  %v613_v35 = vmul.f32 1.442695, %v596_v18  ;;  %v615_v36 = vmul.f32 1.442695, %v597_v19  ;;  %v586_v47 = vsub.f32 %v563_v11, %v585_v14 }
 0x44b   : > { %v617_v37 = vmul.f32 1.442695, %v598_v20  ;;  %v619_v38 = vmul.f32 1.442695, %v599_v21  ;;  %v621_v39 = vmul.f32 1.442695, %v600_v22 }
 0x44c   : > { %1099 = vpow2.f32 %v611_v34  ;;  %v623_v40 = vmul.f32 1.442695, %v601_v23  ;;  %v625_v41 = vmul.f32 1.442695, %v602_v24  ;;  %v627_v42 = vmul.f32 1.442695, %v603_v25 }
 0x44d   : > { %1101 = vpow2.f32 %v613_v35  ;;  %v629_v43 = vmul.f32 1.442695, %v604_v26  ;;  %v631_v44 = vmul.f32 1.442695, %v605_v28  ;;  %v633_v45 = vmul.f32 1.442695, %v606_v29 }
 0x44e   : > { %1103 = vpow2.f32 %v615_v36  ;;  %v635_v46 = vmul.f32 1.442695, %v607_v30  ;;  %v637_v48 = vmul.f32 1.442695, %v608_v31  ;;  %v639_v50 = vmul.f32 1.442695, %v609_v32 }
 0x44f   : > { %1105 = vpow2.f32 %v617_v37  ;;  %v641_v52 = vmul.f32 1.442695, %v610_v33  ;;  %v587_v56 = vmul.f32 1.442695, %v586_v47  ;;  %v685_v33 = vrot.slane %v1539_v27, 2 }
 0x450   : > { %1107 = vpow2.f32 %v619_v38  ;;  %v643_v37 = vld [vmem:[#allocation4] sm:$0x1] }
 0x451   : > { %1109 = vpow2.f32 %v621_v39 }
 0x452   : > { %1111 = vpow2.f32 %v623_v40 }
 0x453   : > { %1113 = vpow2.f32 %v625_v41 }
 0x454   : > { %1115 = vpow2.f32 %v627_v42  ;;  %v668_v42 = vld [vmem:[#allocation5] sm:$0xf] }
 0x455   : > { %1117 = vpow2.f32 %v629_v43 }
 0x456   : > { %v1100_v49 = vpop.eup %1099  ;;  %1119 = vpow2.f32 %v631_v44 }
 0x457   : > { %v1102_v51 = vpop.eup %1101  ;;  %1121 = vpow2.f32 %v633_v45 }
 0x458   : > { %v1104_v53 = vpop.eup %1103  ;;  %1123 = vpow2.f32 %v635_v46  ;;  %v645_v54 = vadd.f32 %v1102_v51, %v1100_v49  ;;  %v676_v55 = vpack.c.bf16 %v1102_v51, %v1100_v49 }
 0x459   : > { %v1106_v57 = vpop.eup %1105  ;;  %1125 = vpow2.f32 %v637_v48 }
 0x45a   : > { %v1108_v58 = vpop.eup %1107  ;;  %1127 = vpow2.f32 %v639_v50  ;;  %v646_v59 = vadd.f32 %v1104_v53, %v645_v54  ;;  %952 = vmatpush3.bf16.msra.mxu0 %v676_v55  ;;  %v677_v60 = vpack.c.bf16 %v1106_v57, %v1104_v53 }
 0x45b   : > { %v1110_v61 = vpop.eup %1109  ;;  %1129 = vpow2.f32 %v641_v52  ;;  %953 = vmatprep.subr.bf16.mxu0 %v1310_v16 }
 0x45c   : > { %v1112_v62 = vpop.eup %1111  ;;  %v647_v63 = vadd.f32 %v1106_v57, %v646_v59  ;;  %v678_v0 = vpack.c.bf16 %v1110_v61, %v1108_v58  ;;  %1131 = vpow2.f32 %v587_v56 }
 0x45d   : > { %v1114_v1 = vpop.eup %1113 }
 0x45e   : > { %v1116_v2 = vpop.eup %1115  ;;  %v648_v3 = vadd.f32 %v1108_v58, %v647_v63  ;;  %954 = vmatpush3.bf16.msra.mxu0 %v677_v60  ;;  %v679_v4 = vpack.c.bf16 %v1114_v1, %v1112_v62 }
 0x45f   : > { %v1118_v5 = vpop.eup %1117  ;;  %955 = vmatprep.subr.bf16.mxu0 %v1310_v16 }
 0x460   : > { %v1120_v6 = vpop.eup %1119  ;;  %v649_v7 = vadd.f32 %v1110_v61, %v648_v3  ;;  %v680_v8 = vpack.c.bf16 %v1118_v5, %v1116_v2 }
 0x461   : > { %v1122_v9 = vpop.eup %1121 }
 0x462   : > { %v1124_v10 = vpop.eup %1123  ;;  %v650_v11 = vadd.f32 %v1112_v62, %v649_v7  ;;  %956 = vmatpush3.bf16.msra.mxu0 %v678_v0  ;;  %v681_v12 = vpack.c.bf16 %v1122_v9, %v1120_v6 }
 0x463   : > { %v1126_v14 = vpop.eup %1125  ;;  %957 = vmatprep.subr.bf16.mxu0 %v1310_v16 }
 0x464   : > { %v1128_v15 = vpop.eup %1127  ;;  %v651_v17 = vadd.f32 %v1114_v1, %v650_v11  ;;  %v682_v18 = vpack.c.bf16 %v1126_v14, %v1124_v10 }
 0x465   : > { %v1130_v19 = vpop.eup %1129 }
 0x466   : > { %v1132_v20 = vpop.eup %1131  ;;  %v652_v21 = vadd.f32 %v1116_v2, %v651_v17  ;;  %958 = vmatpush3.bf16.msra.mxu0 %v679_v4  ;;  %v683_v22 = vpack.c.bf16 %v1130_v19, %v1128_v15 }
 0x467   : > { %959 = vmatprep.subr.bf16.mxu0 %v1310_v16  ;;  %v673_v23 = vrot.slane %v1132_v20, %v1568_v13  ;;  %v644_v40 = vmul.f32 %v1132_v20, %v643_v37 }
 0x468   : > { %v653_v24 = vadd.f32 %v1118_v5, %v652_v21 }
 0x469   : > { %v675_v43 = vmul.f32 %v673_v23, %v668_v42 }
 0x46a   : > { %v654_v25 = vadd.f32 %v1120_v6, %v653_v24  ;;  %960 = vmatpush3.bf16.msra.mxu0 %v680_v8 }
 0x46b   : > { %961 = vmatprep.subr.bf16.mxu0 %v1310_v16 }
 0x46c   : > { %v655_v26 = vadd.f32 %v1122_v9, %v654_v25 }
 0x46e   : > { %v656_v28 = vadd.f32 %v1124_v10, %v655_v26  ;;  %962 = vmatpush3.bf16.msra.mxu0 %v681_v12 }
 0x46f   : > { %963 = vmatprep.subr.bf16.mxu0 %v1310_v16 }
 0x470   : > { %v657_v29 = vadd.f32 %v1126_v14, %v656_v28 }
 0x472   : > { %v658_v30 = vadd.f32 %v1128_v15, %v657_v29  ;;  %964 = vmatpush3.bf16.msra.mxu0 %v682_v18 }
 0x473   : > { %965 = vmatprep.subr.bf16.mxu0 %v1310_v16 }
 0x474   : > { %v659_v31 = vadd.f32 %v1130_v19, %v658_v30 }
 0x476   : > { %v660_v32 = vrot.slane %v659_v31, 4  ;;  %966 = vmatpush3.bf16.msra.mxu0 %v683_v22 }
 0x478   : > { %v661_v34 = vadd.f32 %v660_v32, %v659_v31 }
 0x479   : > { %968 = vmatmul.mubr.bf16.vlgmr.msra.gmra.mrb[4].mxu0 %v685_v33 }
 0x47a   : > { %v662_v35 = vrot.slane %v661_v34, 2 }
 0x47c   : > { %v663_v36 = vadd.f32 %v662_v35, %v661_v34 }
 0x47e   : > { %v664_v38 = vrot.slane %v663_v36, 1 }
 0x480   : > { %v665_v39 = vadd.f32 %v664_v38, %v663_v36 }
 0x482   : > { %v666_v41 = vadd.f32 %v665_v39, %v644_v40 }
 0x484   : > { %667 = vst [vmem:[#allocation4] sm:$0x1] %v666_v41 }
 0x48b   : > { %v734_v27 = vld [vmem:[#allocation4] sm:$0x1] (!%p893_p4) }
 0x48c   : > { %1133 = vrcp.f32 (!%p893_p4), %v734_v27 }
 0x496   : > { %v1134_v48 = vpop.eup (!%p893_p4), %1133 }
 0x497   : > { %v741_v50 = vrot.slane (!%p893_p4), %v1134_v48, %v1568_v13 }
 0x549   : > { %733 = sbr.rel (%p893_p4) target bundleno = 1370 (0x55a), region = 48 }
 0x54c   : > { %v721_v44 = vpop.f32.mrb[4].mxu0 }
 0x54d   : > { %v727_v45 = vadd.f32 %v721_v44, %v675_v43  ;;  %v969_v16 = vpop.f32.mrb[5].mxu0 }
 0x54e   : > { %v724_v46 = vpop.f32.mrb[6].mxu0 }
 0x54f   : > { %728 = vst [vmem:[#allocation5] sm:$0xf] %v727_v45  ;;  %v970_v47 = vpop.f32.mrb[7].mxu0 }
 0x556   : > { %v736_v49 = vld [vmem:[#allocation5] sm:$0xf] }
 0x557   : > { %v743_v51 = vmul.f32 %v741_v50, %v736_v49 }
 0x559   : > { %744 = vst [vmem:[%s260_s1] sm:$0xf] %v743_v51 }
 0x55a PF: > { %s1698_s12 = sld [smem:[#allocation17_spill]]  ;;  %s895_s13 = sshll.u32 %s1287_s23, 1 }
 0x55b   : > { %s757_s7 = sadd.s32 %s1283_s22, %s895_s13  ;;  %s761_s21 = sshll.u32 %s260_s1, 4  ;;  %s1594_s21 = int_to_ptr.vmem [resolvable:$true] %s761_s21 }
 0x55c   : > { %s896_s15 = sshll.u32 %s757_s7, 6  ;;  %s1699_s5 = sld [smem:[#allocation19_spill]] }
 0x55d   : > { %s1700_s18 = sand.u32 1, %s1259_s16   ;;  %s1165_s6 = scalar_lea.vmem %s1594_s21, 64 }
 0x55e   : > { %s746_s9 = scalar_lea.sflag [#allocation8], %s1700_s18  ;;  %p1166_p13 = scmp.ne.s32.totalorder %s1594_s21, %s1165_s6 }
 0x55f   : > { %s1313_s22 = smov [#allocation9]  }
 0x560   : > { %p1701_p3 = scmp.ne.s32.totalorder %s1698_s12, 0  ;;  %s1169_s23 = sshll.u32 %s1313_s22, 4  ;;  %s1170_s23 = int_to_ptr.vmem [resolvable:$false] %s1169_s23 }
 0x561   : > { %s1171_s1 = scalar_lea.vmem %s1170_s23, 128  ;;  %p1172_p5 = scmp.lt.s32.totalorder %s1594_s21, %s1170_s23 }
 0x562   : > { %s759_s10 = scalar_lea.hbm %s1699_s5, %s896_s15  ;;  %p1167_p9 = pnand %p1166_p13, %p1701_p3 }
 0x563   : > { %p1173_p0 = scmp.lt.s32.totalorder %s1171_s1, %s1165_s6 }
 0x564   : > { %p1168_p12 = pneg %p1167_p9 }
 0x565   : > { %p1174_p1 = por %p1173_p0, %p1172_p5 }
 0x567   : > { %p1175_p6 = pnand %p1174_p1, %p1168_p12 }
 0x569   : > { %1178 = shalt.err (!%p1175_p6)
}
 0x56a   : > { %s1179_s11 = scalar_lea.hbm %s759_s10, 64  ;;  %s1183_s13 = scalar_lea.hbm %s1699_s5, 256 }
 0x56b   : > { %p1180_p8 = scmp.ne.s32.totalorder %s759_s10, %s1179_s11  ;;  %p1184_p2 = scmp.lt.u32.totalorder %s759_s10, %s1699_s5 }
 0x56c   : > { %p1185_p7 = scmp.lt.u32.totalorder %s1183_s13, %s1179_s11  ;;  %p1187_p13 = scmp.lt.u32.totalorder %s1179_s11, %s759_s10 }
 0x56d   : > { %p1181_p10 = pnand %p1180_p8, %p1701_p3 }
 0x56e   : > { %p1186_p4 = por %p1185_p7, %p1184_p2 }
 0x56f   : > { %p1182_p11 = pneg %p1181_p10 }
 0x570   : > { %p1188_p9 = por %p1187_p13, %p1186_p4 }
 0x572   : > { %p1189_p12 = pnand %p1188_p9, %p1182_p11 }
 0x574   : > { %1192 = shalt.err (!%p1189_p12)
}
 0x575   : > { %974 = dma.vmem_to_hbm [thread:$0]  (%p1701_p3), %s1594_s21, 64, %s759_s10, %s746_s9  }
 0x576 PF: > { %s1702_s14 = sld [smem:[#allocation12_spill]]  ;;  %p985_p5 = scmp.ge.s32.totalorder %s1303_s27, 2 }
 0x577   : > { %p1703_p0 = scmp.ne.s32.totalorder %s1692_s28, 0 }
 0x579   : > { %p981_p1 = pnand %p985_p5, %p1703_p0 }
 0x57c   : > { %s773_s4 = sand.u32 1, %s1702_s14  }
 0x57d   : > { %s774_s18 = scalar_lea.sflag [#allocation8], %s773_s4 }
 0x57e   : > { %1250 = dma.done.wait (!%p981_p1), %s774_s18, 64  }
 0x57f   : > { %1252 = vsyncadd (!%p981_p1), %s774_s18, 4294967232  ;;  %s20_s27 = sadd.s32 1, %s1303_s27   ;;  %s1705_s22 = sld [smem:[#allocation13_spill]] }
 0x580   : > { %p1622_p6 = scmp.ge.s32.totalorder %s20_s27, 10   ;;  %s1706_s28 = sld [smem:[#allocation14_spill]] }
 0x581   : > { %s1707_s12 = sld [smem:[#allocation15_spill]]  ;;  %s1708_s10 = sld [smem:[#allocation16_spill]] }
 0x582   : > { %s1709_s15 = smov %s1259_s16  ;;  %s1710_s16 = smov %s1263_s17 }
 0x583   : > { %s1711_s17 = smov %s1451_s25  ;;  %s1712_s18 = smov %s1271_s19 }
 0x584   : > { %s1713_s19 = smov %s1275_s20  ;;  %s1714_s20 = smov %s1448_s30 }
 0x585   : > { %s1715_s21 = smov %s1291_s24  ;;  %s1716_s23 = smov %s1299_s26 }
 0x586   : > { %s1717_s24 = smov %s1706_s28  ;;  %19 = sbr.rel (!%p1622_p6) target bundleno = 13 (0xd), region = 92 }
 0x587   : > { %s1718_s25 = smov %s1707_s12  ;;  %s1719_s26 = smov %s1708_s10 }
 0x58d   :  { %779 = vsyncpa [#allocation7], 1 }
 0x58e   :  { %781 = vsyncpa [#allocation7 + $0x1], 1 }
 0x58f   :  { %782 = vsyncpa [#allocation8], 1 }
 0x590   :  { %784 = vsyncpa [#allocation8 + $0x1], 1 }

</bundles_post_ra>
